<compile_context>
chip_gen: v6e
topology: v6e:2x2x1
jax: 0.10.0
libtpu: 0.0.40
codegen_flags: <defaults>
</compile_context>

<pallas_src>
import jax
import jax.numpy as jnp
from jax.experimental import pallas as pl
from jax.experimental.pallas import tpu as pltpu

# Config chosen: mode = multiclass_classification (out_channels = 7),
# task_level = graph  ->  output is global_add_pool over all nodes (single
# graph, batch=None), shape [1, 7].
IN_CHANNELS = 3
HIDDEN = 16
OUT_CHANNELS = 7

_ROW_PAD = 256  # node-count padding / max row tile (multiple of 8 and 16)


def _row_tile(n_pad: int) -> int:
    """Row tile for the A stream: keep 2 (double-buffer) x TM x n_pad bf16
    bytes under ~24 MiB so the pipeline fits v7x (64 MiB VMEM) and v5e/v6e."""
    tm = _ROW_PAD
    while tm > 16 and 2 * tm * n_pad * 2 > 24 * 1024 * 1024:
        tm //= 2
    return tm  # one of {256,128,64,32,16}; all divide _ROW_PAD


def _gcn_kernel(a_ref, p_ref, s_ref, b1_ref, w2_ref, nb2_ref, out_ref):
    # a_ref : [TM, Np]  bf16   row tile of normalized adjacency
    # p_ref : [Np, 16]  bf16   resident P = X @ W1
    # s_ref : [TM, 1]   f32    column sums of A (1^T A), this tile's rows
    # b1_ref: [1, 16]   f32
    # w2_ref: [16, 7]   f32
    # nb2   : [1, 7]    f32    N * b2
    # out   : [1, 7]    f32    resident accumulator (pooled logits)
    i = pl.program_id(0)

    @pl.when(i == 0)
    def _init():
        out_ref[...] = jnp.zeros_like(out_ref)

    # ---- layer 1 for this row tile: H1 = relu(A_tile @ P + b1) ----
    h1 = jnp.dot(a_ref[...], p_ref[...], preferred_element_type=jnp.float32)
    h1 = jnp.maximum(h1 + b1_ref[...], 0.0)                      # [TM, 16]

    # ---- fused layer 2 + global_add_pool contribution of these rows ----
    # sum_j s_j * H1_j  -> [1, 16]   (VPU multiply + sublane reduce)
    partial16 = jnp.sum(h1 * s_ref[...], axis=0, keepdims=True)
    out_ref[...] += jnp.dot(partial16, w2_ref[...],
                            preferred_element_type=jnp.float32)  # [1, 7]

    @pl.when(i == pl.num_programs(0) - 1)
    def _finalize():
        out_ref[...] += nb2_ref[...]   # bias contributes once per real node


def gcn_forward(x, edge_index, params):
    """x: [N, 3] float32, edge_index: [2, E] int32 (row 0 = source, row 1 = target)."""
    w1, b1, w2, b2 = params
    n = x.shape[0]
    src, dst = edge_index[0], edge_index[1]

    # ---- glue (plain JAX): dense Â with remaining self-loops + GCN norm ----
    a_hat = jnp.zeros((n, n), jnp.float32).at[dst, src].add(1.0)
    idx = jnp.arange(n)
    diag = jnp.diagonal(a_hat)
    a_hat = a_hat.at[idx, idx].add(jnp.where(diag > 0.0, 0.0, 1.0))
    deg = jnp.sum(a_hat, axis=1)
    dinv = jnp.where(deg > 0.0, jax.lax.rsqrt(deg), 0.0)
    a_norm = dinv[:, None] * a_hat * dinv[None, :]        # single fused pass in XLA

    # column sums of A_norm (= 1^T A_norm), used to fuse global_add_pool
    s = dinv * jnp.dot(dinv, a_hat)                        # [n]

    # hoisted tiny first-layer feature matmul: P = X @ W1
    p = jnp.dot(x, w1)                                     # [n, 16]

    # ---- pad to TPU-friendly tiles ----
    n_pad = ((n + _ROW_PAD - 1) // _ROW_PAD) * _ROW_PAD
    tm = _row_tile(n_pad)
    grid = (n_pad // tm,)

    a_pad = jnp.zeros((n_pad, n_pad), jnp.bfloat16).at[:n, :n].set(
        a_norm.astype(jnp.bfloat16))
    p_pad = jnp.zeros((n_pad, HIDDEN), jnp.bfloat16).at[:n, :].set(
        p.astype(jnp.bfloat16))
    s_pad = jnp.zeros((n_pad, 1), jnp.float32).at[:n, 0].set(s)
    nb2 = (float(n) * b2).astype(jnp.float32)              # [1, 7]

    cost = pl.CostEstimate(
        flops=2 * n_pad * n_pad * HIDDEN + 2 * n_pad * HIDDEN * OUT_CHANNELS,
        transcendentals=0,
        bytes_accessed=n_pad * n_pad * 2 + n_pad * (HIDDEN * 2 + 4)
        + (HIDDEN * (1 + OUT_CHANNELS) + 2 * OUT_CHANNELS) * 4,
    )

    out = pl.pallas_call(
        _gcn_kernel,
        out_shape=jax.ShapeDtypeStruct((1, OUT_CHANNELS), jnp.float32),
        grid_spec=pltpu.PrefetchScalarGridSpec(
            num_scalar_prefetch=0,
            grid=grid,
            in_specs=[
                pl.BlockSpec((tm, n_pad), lambda i: (i, 0)),          # A row tile
                pl.BlockSpec((n_pad, HIDDEN), lambda i: (0, 0)),      # P (resident)
                pl.BlockSpec((tm, 1), lambda i: (i, 0)),              # s slice
                pl.BlockSpec((1, HIDDEN), lambda i: (0, 0)),          # b1
                pl.BlockSpec((HIDDEN, OUT_CHANNELS), lambda i: (0, 0)),  # W2
                pl.BlockSpec((1, OUT_CHANNELS), lambda i: (0, 0)),    # N*b2
            ],
            out_specs=pl.BlockSpec((1, OUT_CHANNELS), lambda i: (0, 0)),
        ),
        compiler_params=pltpu.CompilerParams(
            dimension_semantics=("arbitrary",),       # reduction over row tiles
            vmem_limit_bytes=48 * 1024 * 1024,
        ),
        cost_estimate=cost,
    )(a_pad, p_pad, s_pad, b1, w2, nb2)
    return out


def init_params(key):
    k1, k2 = jax.random.split(key)
    # Glorot-uniform like GCNConv's default reset_parameters; bias = 0.
    lim1 = (6.0 / (IN_CHANNELS + HIDDEN)) ** 0.5
    lim2 = (6.0 / (HIDDEN + OUT_CHANNELS)) ** 0.5
    w1 = jax.random.uniform(k1, (IN_CHANNELS, HIDDEN), jnp.float32, -lim1, lim1)
    b1 = jnp.zeros((1, HIDDEN), jnp.float32)
    w2 = jax.random.uniform(k2, (HIDDEN, OUT_CHANNELS), jnp.float32, -lim2, lim2)
    b2 = jnp.zeros((1, OUT_CHANNELS), jnp.float32)
    return (w1, b1, w2, b2)


if __name__ == "__main__":
    key = jax.random.PRNGKey(0)
    kx, kp = jax.random.split(key)

    N = 8
    x = jax.random.normal(kx, (N, IN_CHANNELS), jnp.float32)

    # Small deterministic bidirectional ring graph: 0-1-2-...-7-0
    src = jnp.arange(N, dtype=jnp.int32)
    dst = (src + 1) % N
    edge_index = jnp.stack(
        [jnp.concatenate([src, dst]), jnp.concatenate([dst, src])], axis=0
    )  # [2, 16]

    params = init_params(kp)

    out = jax.jit(gcn_forward)(x, edge_index, params)
    out = jax.block_until_ready(out)
    assert out.shape == (1, OUT_CHANNELS)
    assert bool(jnp.all(jnp.isfinite(out)))
    print("KERNEL_OK")
</pallas_src>

<mosaic_0001>
module attributes {stable_mosaic.version = 11 : i64} {
  func.func private @main(%arg0: i32) attributes {dimension_semantics = [#tpu.dimension_semantics<core_parallel>], iteration_bounds = array<i64: 2>, tpu.core_type = #tpu.core_type<sc_scalar_subcore>, window_params = []} {
    return
  }
}

module attributes {stable_mosaic.version = 11 : i64} {
  func.func private @main(%arg0: i32) attributes {dimension_semantics = [#tpu.dimension_semantics<core_parallel>], iteration_bounds = array<i64: 2>, tpu.core_type = #tpu.core_type<sc_scalar_subcore>, window_params = []} {
    return
  }
}

module attributes {stable_mosaic.version = 11 : i64} {
  func.func @_gcn_kernel(%arg0: i32, %arg1: memref<256x256xbf16, #tpu.memory_space<vmem>>, %arg2: memref<256x16xbf16, #tpu.memory_space<vmem>>, %arg3: memref<256x1xf32, #tpu.memory_space<vmem>>, %arg4: memref<1x16xf32, #tpu.memory_space<vmem>>, %arg5: memref<16x7xf32, #tpu.memory_space<vmem>>, %arg6: memref<1x7xf32, #tpu.memory_space<vmem>>, %arg7: memref<1x7xf32, #tpu.memory_space<vmem>>) attributes {dimension_semantics = [#tpu.dimension_semantics<arbitrary>], iteration_bounds = array<i64: 1>, scalar_prefetch = 0 : i64, scratch_operands = 0 : i64, tpu.core_type = #tpu.core_type<tc>, window_params = [{transform_indices = @transform_0, window_bounds = array<i64: 256, 256>}, {pipeline_mode = #tpu.pipeline_mode<synchronous>, transform_indices = @transform_1, window_bounds = array<i64: 256, 16>}, {transform_indices = @transform_2, window_bounds = array<i64: 256, 1>}, {pipeline_mode = #tpu.pipeline_mode<synchronous>, transform_indices = @transform_3, window_bounds = array<i64: 1, 16>}, {pipeline_mode = #tpu.pipeline_mode<synchronous>, transform_indices = @transform_4, window_bounds = array<i64: 16, 7>}, {pipeline_mode = #tpu.pipeline_mode<synchronous>, transform_indices = @transform_5, window_bounds = array<i64: 1, 7>}, {pipeline_mode = #tpu.pipeline_mode<synchronous>, transform_indices = @transform_6, window_bounds = array<i64: 1, 7>}]} {
    %c0_i32 = arith.constant 0 : i32
    %0 = arith.cmpi eq, %arg0, %c0_i32 : i32
    %1 = arith.extui %0 : i1 to i32
    %c0_i32_0 = arith.constant 0 : i32
    %2 = arith.cmpi ne, %1, %c0_i32_0 : i32
    scf.if %2 {
      %cst_19 = arith.constant 0.000000e+00 : f32
      %24 = vector.broadcast %cst_19 : f32 to vector<1x7xf32>
      %c0_20 = arith.constant 0 : index
      %c0_21 = arith.constant 0 : index
      %25 = vector.load %arg7[%c0_20, %c0_21] : memref<1x7xf32, #tpu.memory_space<vmem>>, vector<1x7xf32>
      tpu.vector_store %arg7[%c0_20, %c0_21], %24 {strides = array<i32>} : memref<1x7xf32, #tpu.memory_space<vmem>>, vector<1x7xf32>,
    } else {
    }
    %c0 = arith.constant 0 : index
    %c0_1 = arith.constant 0 : index
    %3 = vector.load %arg1[%c0, %c0_1] : memref<256x256xbf16, #tpu.memory_space<vmem>>, vector<256x256xbf16>
    %c0_2 = arith.constant 0 : index
    %c0_3 = arith.constant 0 : index
    %4 = vector.load %arg2[%c0_2, %c0_3] : memref<256x16xbf16, #tpu.memory_space<vmem>>, vector<256x16xbf16>
    %cst = arith.constant dense<0.000000e+00> : vector<256x16xf32>
    %5 = tpu.matmul %3, %4, %cst {dimension_numbers = #tpu.dot_dimension_numbers<[1], [0], [0], [1], [0, 0, 1, 1], [], []>} : vector<256x256xbf16>, vector<256x16xbf16>, vector<256x16xf32> -> vector<256x16xf32>
    %c0_4 = arith.constant 0 : index
    %c0_5 = arith.constant 0 : index
    %6 = vector.load %arg4[%c0_4, %c0_5] : memref<1x16xf32, #tpu.memory_space<vmem>>, vector<1x16xf32>
    %7 = vector.broadcast %6 : vector<1x16xf32> to vector<256x16xf32>
    %8 = arith.addf %5, %7 : vector<256x16xf32>
    %cst_6 = arith.constant 0.000000e+00 : f32
    %9 = vector.broadcast %cst_6 : f32 to vector<256x16xf32>
    %10 = arith.maximumf %8, %9 : vector<256x16xf32>
    %c0_7 = arith.constant 0 : index
    %c0_8 = arith.constant 0 : index
    %11 = vector.load %arg3[%c0_7, %c0_8] : memref<256x1xf32, #tpu.memory_space<vmem>>, vector<256x1xf32>
    %12 = vector.broadcast %11 : vector<256x1xf32> to vector<256x16xf32>
    %13 = arith.mulf %10, %12 : vector<256x16xf32>
    %cst_9 = arith.constant dense<0.000000e+00> : vector<16xf32>
    %14 = vector.multi_reduction <add>, %13, %cst_9 [0] : vector<256x16xf32> to vector<16xf32>
    %15 = vector.shape_cast %14 : vector<16xf32> to vector<1x16xf32>
    %c0_10 = arith.constant 0 : index
    %c0_11 = arith.constant 0 : index
    %16 = vector.load %arg7[%c0_10, %c0_11] : memref<1x7xf32, #tpu.memory_space<vmem>>, vector<1x7xf32>
    %c0_12 = arith.constant 0 : index
    %c0_13 = arith.constant 0 : index
    %17 = vector.load %arg5[%c0_12, %c0_13] : memref<16x7xf32, #tpu.memory_space<vmem>>, vector<16x7xf32>
    %cst_14 = arith.constant dense<0.000000e+00> : vector<1x7xf32>
    %18 = tpu.matmul %15, %17, %cst_14 {dimension_numbers = #tpu.dot_dimension_numbers<[1], [0], [0], [1], [0, 0, 1, 1], [], []>} : vector<1x16xf32>, vector<16x7xf32>, vector<1x7xf32> -> vector<1x7xf32>
    %19 = arith.addf %16, %18 : vector<1x7xf32>
    %c0_15 = arith.constant 0 : index
    %c0_16 = arith.constant 0 : index
    %20 = vector.load %arg7[%c0_15, %c0_16] : memref<1x7xf32, #tpu.memory_space<vmem>>, vector<1x7xf32>
    tpu.vector_store %arg7[%c0_15, %c0_16], %19 {strides = array<i32>} : memref<1x7xf32, #tpu.memory_space<vmem>>, vector<1x7xf32>,
    %c0_i32_17 = arith.constant 0 : i32
    %21 = arith.cmpi eq, %arg0, %c0_i32_17 : i32
    %22 = arith.extui %21 : i1 to i32
    %c0_i32_18 = arith.constant 0 : i32
    %23 = arith.cmpi ne, %22, %c0_i32_18 : i32
    scf.if %23 {
      %c0_19 = arith.constant 0 : index
      %c0_20 = arith.constant 0 : index
      %24 = vector.load %arg7[%c0_19, %c0_20] : memref<1x7xf32, #tpu.memory_space<vmem>>, vector<1x7xf32>
      %c0_21 = arith.constant 0 : index
      %c0_22 = arith.constant 0 : index
      %25 = vector.load %arg6[%c0_21, %c0_22] : memref<1x7xf32, #tpu.memory_space<vmem>>, vector<1x7xf32>
      %26 = arith.addf %24, %25 : vector<1x7xf32>
      %c0_23 = arith.constant 0 : index
      %c0_24 = arith.constant 0 : index
      %27 = vector.load %arg7[%c0_23, %c0_24] : memref<1x7xf32, #tpu.memory_space<vmem>>, vector<1x7xf32>
      tpu.vector_store %arg7[%c0_23, %c0_24], %26 {strides = array<i32>} : memref<1x7xf32, #tpu.memory_space<vmem>>, vector<1x7xf32>,
    } else {
    }
    return
  }
  func.func @transform_0(%arg0: i32) -> (i32, i32) {
    %c0_i32 = arith.constant 0 : i32
    %c0_i32_0 = arith.constant 0 : i32
    return %arg0, %c0_i32 : i32, i32
  }
  func.func @transform_1(%arg0: i32) -> (i32, i32) {
    %c0_i32 = arith.constant 0 : i32
    %c0_i32_0 = arith.constant 0 : i32
    %c0_i32_1 = arith.constant 0 : i32
    return %c0_i32, %c0_i32_0 : i32, i32
  }
  func.func @transform_2(%arg0: i32) -> (i32, i32) {
    %c0_i32 = arith.constant 0 : i32
    %c0_i32_0 = arith.constant 0 : i32
    return %arg0, %c0_i32 : i32, i32
  }
  func.func @transform_3(%arg0: i32) -> (i32, i32) {
    %c0_i32 = arith.constant 0 : i32
    %c0_i32_0 = arith.constant 0 : i32
    %c0_i32_1 = arith.constant 0 : i32
    return %c0_i32, %c0_i32_0 : i32, i32
  }
  func.func @transform_4(%arg0: i32) -> (i32, i32) {
    %c0_i32 = arith.constant 0 : i32
    %c0_i32_0 = arith.constant 0 : i32
    %c0_i32_1 = arith.constant 0 : i32
    return %c0_i32, %c0_i32_0 : i32, i32
  }
  func.func @transform_5(%arg0: i32) -> (i32, i32) {
    %c0_i32 = arith.constant 0 : i32
    %c0_i32_0 = arith.constant 0 : i32
    %c0_i32_1 = arith.constant 0 : i32
    return %c0_i32, %c0_i32_0 : i32, i32
  }
  func.func @transform_6(%arg0: i32) -> (i32, i32) {
    %c0_i32 = arith.constant 0 : i32
    %c0_i32_0 = arith.constant 0 : i32
    %c0_i32_1 = arith.constant 0 : i32
    return %c0_i32, %c0_i32_0 : i32, i32
  }
}

</mosaic_0001>

<bundles_post_ra>
// kernel: gcn_forward.1
= control target key start
LH: loop header
LB: loop body
LE: loop exit
PB: predicated region body
PF: predicated region fallthrough
CT: control target
= control target key end

     0   :  { %v1225_v2 = vmov 0   ;;  %s1694_s0 = inlined_call_operand.vmem [shape: bf16[256,256], index: 0, kind: input, shape index: {}]   ;;  %s1695_s1 = inlined_call_operand.vmem [shape: bf16[256,16], index: 1, kind: input, shape index: {}]   ;;  %s1696_s2 = inlined_call_operand.vmem [shape: f32[256,1], index: 2, kind: input, shape index: {}]   ;;  %s1697_s3 = inlined_call_operand.vmem [shape: f32[1,16], index: 3, kind: input, shape index: {}]   ;;  %s1698_s4 = inlined_call_operand.vmem [shape: f32[16,7], index: 4, kind: input, shape index: {}]   ;;  %s1699_s5 = inlined_call_operand.vmem [shape: f32[1,7], index: 5, kind: input, shape index: {}]   ;;  %s1700_s6 = inlined_call_operand.hbm [shape: f32[1,7], index: 6, kind: output, shape index: {}]  }
   0x1   :  { %v1139_v0 = vld [vmem:[%s1695_s1 + $0x78] sm:$0xff]   ;;  %1137 = vset.pattern.permute.xlu0 %v1225_v2  ;;  %1138 = vset.pattern.permute.xlu1 %v1225_v2  ;;  %v1141_v3 = vld [vmem:[%s1695_s1 + $0x70] sm:$0xff]   ;;  %v1143_v5 = vld [vmem:[%s1695_s1 + $0x68] sm:$0xff]  }
   0x2   :  { %v1140_v1 = vld [vmem:[%s1695_s1 + $0x38] sm:$0xff]   ;;  %995 = vmatprep.subr.bf16.mxu0 %v1139_v0  ;;  %1117 = vmatprep.subr.bf16.mxu1 %v1139_v0  ;;  %v1142_v4 = vld [vmem:[%s1695_s1 + $0x30] sm:$0xff]   ;;  %v1144_v6 = vld [vmem:[%s1695_s1 + $0x28] sm:$0xff]  }
   0x3   :  { %996 = vmatpush3.bf16.msra.mxu0 %v1140_v1  ;;  %1125 = vmatpush3.bf16.msra.mxu1 %v1140_v1  ;;  %v1145_v7 = vld [vmem:[%s1695_s1 + $0x60] sm:$0xff]   ;;  %v1147_v9 = vld [vmem:[%s1695_s1 + $0x58] sm:$0xff]   ;;  %v1149_v11 = vld [vmem:[%s1695_s1 + $0x50] sm:$0xff]  }
   0x4   :  { %997 = vmatprep.subr.bf16.mxu0 %v1141_v3  ;;  %1118 = vmatprep.subr.bf16.mxu1 %v1141_v3  ;;  %v1146_v8 = vld [vmem:[%s1695_s1 + $0x20] sm:$0xff]   ;;  %v1148_v10 = vld [vmem:[%s1695_s1 + $0x18] sm:$0xff]   ;;  %v1150_v14 = vld [vmem:[%s1695_s1 + $0x10] sm:$0xff]  }
   0x5   :  { %v1157_v12 = vld [vmem:[%s1694_s0 + $0x4] ss:$8 sps:$4 sm:$0xff]   ;;  %v1160_v13 = vld [vmem:[%s1694_s0 + $0x94] ss:$8 sps:$4 sm:$0xff]   ;;  %v1155_v19 = vld [vmem:[%s1694_s0] ss:$8 sps:$4 sm:$0xff]  }
   0x6   :  { %v1151_v15 = vld [vmem:[%s1695_s1 + $0x48] sm:$0xff]   ;;  %390 = vmatprep.mubr.bf16.mxu0 %v1157_v12  ;;  %462 = vmatprep.mubr.bf16.mxu1 %v1160_v13  ;;  %v1153_v17 = vld [vmem:[%s1695_s1 + $0x40] sm:$0xff]   ;;  %v1158_v20 = vld [vmem:[%s1694_s0 + $0x90] ss:$8 sps:$4 sm:$0xff]  }
   0x7   :  { %998 = vmatpush3.bf16.msra.mxu0 %v1142_v4  ;;  %1126 = vmatpush3.bf16.msra.mxu1 %v1142_v4  ;;  %v1152_v16 = vld [vmem:[%s1695_s1 + $0x8] sm:$0xff]   ;;  %v1154_v18 = vld [vmem:[%s1695_s1] sm:$0xff]   ;;  %v1161_v21 = vld [vmem:[%s1694_s0 + $0x14] ss:$8 sps:$4 sm:$0xff]  }
   0x8   :  { %999 = vmatprep.subr.bf16.mxu0 %v1143_v5  ;;  %1119 = vmatprep.subr.bf16.mxu1 %v1143_v5  ;;  %v1163_v22 = vld [vmem:[%s1694_s0 + $0xa4] ss:$8 sps:$4 sm:$0xff]   ;;  %v553_v24 = vld [vmem:[%s1696_s2 + $0x10] sm:$0xff]  ;;  %v554_v27 = vld [vmem:[%s1696_s2 + $0x18] sm:$0xff] }
   0x9   :  { %v551_v23 = vld [vmem:[%s1696_s2] sm:$0xff]  ;;  %595 = vperm.xlu1 %1138, %v553_v24   ;;  %v1165_v25 = vld [vmem:[%s1694_s0 + $0x10] ss:$8 sps:$4 sm:$0xff]   ;;  %v552_v26 = vld [vmem:[%s1696_s2 + $0x8] sm:$0xff] }
   0xa   :  { %585 = vperm.xlu0 %1137, %v551_v23   ;;  %v1166_v28 = vld [vmem:[%s1694_s0 + $0xa0] ss:$8 sps:$4 sm:$0xff]   ;;  %v1167_v29 = vld [vmem:[%s1694_s0 + $0x24] ss:$8 sps:$4 sm:$0xff]   ;;  %v1169_v30 = vld [vmem:[%s1694_s0 + $0xb4] ss:$8 sps:$4 sm:$0xff]  }
   0xb   :  { %1000 = vmatpush3.bf16.msra.mxu0 %v1144_v6  ;;  %1127 = vmatpush3.bf16.msra.mxu1 %v1144_v6  ;;  %v555_v31 = vld [vmem:[%s1696_s2 + $0x20] sm:$0xff]  ;;  %v556_v32 = vld [vmem:[%s1696_s2 + $0x28] sm:$0xff]  ;;  %v557_v33 = vld [vmem:[%s1696_s2 + $0x30] sm:$0xff] }
   0xc   :  { %1001 = vmatprep.subr.bf16.mxu0 %v1145_v7  ;;  %1120 = vmatprep.subr.bf16.mxu1 %v1145_v7  ;;  %v558_v34 = vld [vmem:[%s1696_s2 + $0x38] sm:$0xff]  ;;  %v1171_v35 = vld [vmem:[%s1694_s0 + $0x20] ss:$8 sps:$4 sm:$0xff]   ;;  %v1175_v38 = vld [vmem:[%s1694_s0 + $0xc4] ss:$8 sps:$4 sm:$0xff]  }
   0xd   :  { %600 = vperm.xlu1 %1138, %v554_v27   ;;  %v1172_v36 = vld [vmem:[%s1694_s0 + $0xb0] ss:$8 sps:$4 sm:$0xff]   ;;  %v1173_v37 = vld [vmem:[%s1694_s0 + $0x34] ss:$8 sps:$4 sm:$0xff]  }
   0xe   :  { %590 = vperm.xlu0 %1137, %v552_v26  }
   0xf   :  { %1002 = vmatpush3.bf16.msra.mxu0 %v1146_v8  ;;  %1128 = vmatpush3.bf16.msra.mxu1 %v1146_v8 }
  0x10   :  { %1003 = vmatprep.subr.bf16.mxu0 %v1147_v9  ;;  %1121 = vmatprep.subr.bf16.mxu1 %v1147_v9 }
  0x11   :  { %610 = vperm.xlu1 %1138, %v556_v32  }
  0x12   :  { %605 = vperm.xlu0 %1137, %v555_v31  }
  0x13   :  { %1004 = vmatpush3.bf16.msra.mxu0 %v1148_v10  ;;  %1129 = vmatpush3.bf16.msra.mxu1 %v1148_v10 }
  0x14   :  { %1005 = vmatprep.subr.bf16.mxu0 %v1149_v11  ;;  %1122 = vmatprep.subr.bf16.mxu1 %v1149_v11 }
  0x15   :  { %620 = vperm.xlu1 %1138, %v558_v34  }
  0x16   :  { %615 = vperm.xlu0 %1137, %v557_v33  }
  0x17   :  { %1006 = vmatpush3.bf16.msra.mxu0 %v1150_v14  ;;  %1130 = vmatpush3.bf16.msra.mxu1 %v1150_v14 }
  0x18   :  { %1007 = vmatprep.subr.bf16.mxu0 %v1151_v15  ;;  %1123 = vmatprep.subr.bf16.mxu1 %v1151_v15 }
  0x1b   :  { %1008 = vmatpush3.bf16.msra.mxu0 %v1152_v16  ;;  %1131 = vmatpush3.bf16.msra.mxu1 %v1152_v16 }
  0x1c   :  { %1009 = vmatprep.subr.bf16.mxu0 %v1153_v17  ;;  %1124 = vmatprep.subr.bf16.mxu1 %v1153_v17 }
  0x1f   :  { %1010 = vmatpush3.bf16.msra.mxu0 %v1154_v18  ;;  %1132 = vmatpush3.bf16.msra.mxu1 %v1154_v18 }
  0x22   :  { %391 = vmatmul.mubr.bf16.vlgmr.msra.gmra.mxu0 %v1155_v19  ;;  %463 = vmatmul.mubr.bf16.vlgmr.msra.gmra.mxu1 %v1158_v20 }
  0x23   :  { %398 = vmatprep.mubr.bf16.mxu0 %v1161_v21  ;;  %470 = vmatprep.mubr.bf16.mxu1 %v1163_v22 }
  0x2a   :  { %399 = vmatmul.mubr.bf16.gmra.mxu0 %v1165_v25  ;;  %471 = vmatmul.mubr.bf16.gmra.mxu1 %v1166_v28 }
  0x2b   :  { %406 = vmatprep.mubr.bf16.mxu0 %v1167_v29  ;;  %478 = vmatprep.mubr.bf16.mxu1 %v1169_v30 }
  0x2c   :  { %11 = vsyncpa [#allocation3], 0  ;;  %v559_v39 = vld [vmem:[%s1696_s2 + $0x40] sm:$0xff]  ;;  %v560_v40 = vld [vmem:[%s1696_s2 + $0x48] sm:$0xff]  ;;  %vm29_vm0 = vcmask 49152   ;;  %v1226_v17 = vmov 0.0  }
  0x2d   :  { %625 = vperm.xlu0 %1137, %v559_v39   ;;  %630 = vperm.xlu1 %1138, %v560_v40   ;;  %v561_v41 = vld [vmem:[%s1696_s2 + $0x50] sm:$0xff]  ;;  %v562_v42 = vld [vmem:[%s1696_s2 + $0x58] sm:$0xff]  ;;  %v1178_v44 = vld [vmem:[%s1694_s0 + $0xc0] ss:$8 sps:$4 sm:$0xff]   ;;  %30 = vst.msk [vmem:[#allocation2] sm:$0x1] %vm29_vm0, %v1226_v17 }
  0x2e   :  { %v1177_v43 = vld [vmem:[%s1694_s0 + $0x30] ss:$8 sps:$4 sm:$0xff]   ;;  %v1179_v45 = vld [vmem:[%s1694_s0 + $0x44] ss:$8 sps:$4 sm:$0xff]   ;;  %v1181_v46 = vld [vmem:[%s1694_s0 + $0xd4] ss:$8 sps:$4 sm:$0xff]   ;;  %1110 = vmatprep.subr.mxu1 %v1226_v17 }
  0x2f   :  { %v563_v47 = vld [vmem:[%s1696_s2 + $0x60] sm:$0xff]  ;;  %v564_v48 = vld [vmem:[%s1696_s2 + $0x68] sm:$0xff]  ;;  %v565_v49 = vld [vmem:[%s1696_s2 + $0x70] sm:$0xff]  ;;  %vm1227_vm1 = vmmov 0   ;;  %vm775_vm2 = vcmask 130048   ;;  %s1228_s12 = smov [#allocation2]  }
  0x30   :  { %v566_v50 = vld [vmem:[%s1696_s2 + $0x78] sm:$0xff]  ;;  %v1183_v51 = vld [vmem:[%s1694_s0 + $0x40] ss:$8 sps:$4 sm:$0xff]   ;;  %v1187_v54 = vld [vmem:[%s1694_s0 + $0xe4] ss:$8 sps:$4 sm:$0xff]   ;;  %s937_s13 = sshll.u32 %s1228_s12, 4  ;;  %s938_s13 = int_to_ptr.vmem [resolvable:$true] %s937_s13 }
  0x31   :  { %635 = vperm.xlu0 %1137, %v561_v41   ;;  %640 = vperm.xlu1 %1138, %v562_v42   ;;  %v1184_v52 = vld [vmem:[%s1694_s0 + $0xd0] ss:$8 sps:$4 sm:$0xff]   ;;  %v1185_v53 = vld [vmem:[%s1694_s0 + $0x54] ss:$8 sps:$4 sm:$0xff]   ;;  %v567_v55 = vld [vmem:[%s1696_s2 + $0x80] sm:$0xff]  ;;  %s1203_s14 = scalar_lea.vmem %s938_s13, 16  ;;  %p1208_p1 = scmp.lt.s32.totalorder %s938_s13, %s938_s13 }
  0x32   :  { %407 = vmatmul.mubr.bf16.gmra.mxu0 %v1171_v35  ;;  %479 = vmatmul.mubr.bf16.gmra.mxu1 %v1172_v36  ;;  %v568_v56 = vld [vmem:[%s1696_s2 + $0x88] sm:$0xff]  ;;  %v569_v57 = vld [vmem:[%s1696_s2 + $0x90] sm:$0xff]  ;;  %v570_v58 = vld [vmem:[%s1696_s2 + $0x98] sm:$0xff]  ;;  %p1204_p0 = scmp.ne.s32.totalorder %s938_s13, %s1203_s14  ;;  %s1207_s15 = scalar_lea.vmem %s938_s13, 32 }
  0x33   :  { %414 = vmatprep.mubr.bf16.mxu0 %v1173_v37  ;;  %486 = vmatprep.mubr.bf16.mxu1 %v1175_v38  ;;  %v1189_v59 = vld [vmem:[%s1694_s0 + $0x50] ss:$8 sps:$4 sm:$0xff]   ;;  %v1190_v60 = vld [vmem:[%s1694_s0 + $0xe0] ss:$8 sps:$4 sm:$0xff]   ;;  %v1191_v61 = vld [vmem:[%s1694_s0 + $0x64] ss:$8 sps:$4 sm:$0xff]   ;;  %p1209_p2 = scmp.lt.s32.totalorder %s1207_s15, %s1203_s14 }
  0x34   :  { %v1193_v62 = vld [vmem:[%s1694_s0 + $0xf4] ss:$8 sps:$4 sm:$0xff]   ;;  %v571_v63 = vld [vmem:[%s1696_s2 + $0xa0] sm:$0xff]  ;;  %v572_v0 = vld [vmem:[%s1696_s2 + $0xa8] sm:$0xff] }
  0x35   :  { %645 = vperm.xlu0 %1137, %v563_v47   ;;  %650 = vperm.xlu1 %1138, %v564_v48   ;;  %v573_v1 = vld [vmem:[%s1696_s2 + $0xb0] sm:$0xff]  ;;  %v574_v2 = vld [vmem:[%s1696_s2 + $0xb8] sm:$0xff]  ;;  %v1195_v3 = vld [vmem:[%s1694_s0 + $0x60] ss:$8 sps:$4 sm:$0xff]   ;;  %p1210_p3 = por %p1209_p2, %p1208_p1 }
  0x36   :  { %v1196_v4 = vld [vmem:[%s1694_s0 + $0xf0] ss:$8 sps:$4 sm:$0xff]   ;;  %v1197_v5 = vld [vmem:[%s1694_s0 + $0x74] ss:$8 sps:$4 sm:$0xff]   ;;  %v575_v6 = vld [vmem:[%s1696_s2 + $0xc0] sm:$0xff] }
  0x37   :  { %v576_v7 = vld [vmem:[%s1696_s2 + $0xc8] sm:$0xff]  ;;  %v577_v8 = vld [vmem:[%s1696_s2 + $0xd0] sm:$0xff]  ;;  %v578_v9 = vld [vmem:[%s1696_s2 + $0xd8] sm:$0xff]  ;;  %p1211_p4 = pnand %p1210_p3, %p1204_p0 }
  0x38   :  { %v1199_v10 = vld [vmem:[%s1694_s0 + $0x70] ss:$8 sps:$4 sm:$0xff]   ;;  %v1200_v11 = vld [vmem:[%s1694_s0 + $0x84] ss:$8 sps:$4 sm:$0xff]   ;;  %v1202_v16 = vld [vmem:[%s1694_s0 + $0x80] ss:$8 sps:$4 sm:$0xff]  }
  0x39   :  { %655 = vperm.xlu0 %1137, %v565_v49   ;;  %660 = vperm.xlu1 %1138, %v566_v50   ;;  %v579_v12 = vld [vmem:[%s1696_s2 + $0xe0] sm:$0xff]  ;;  %v580_v13 = vld [vmem:[%s1696_s2 + $0xe8] sm:$0xff]  ;;  %v581_v14 = vld [vmem:[%s1696_s2 + $0xf0] sm:$0xff] }
  0x3a   :  { %415 = vmatmul.mubr.bf16.gmra.mxu0 %v1177_v43  ;;  %487 = vmatmul.mubr.bf16.gmra.mxu1 %v1178_v44  ;;  %v582_v15 = vld [vmem:[%s1696_s2 + $0xf8] sm:$0xff]  ;;  %v847_v18 = vld [vmem:[%s1698_s4 + $0x8] sm:$0xff]  ;;  %v846_v19 = vld [vmem:[%s1698_s4] sm:$0xff] }
  0x3b   :  { %422 = vmatprep.mubr.bf16.mxu0 %v1179_v45  ;;  %494 = vmatprep.mubr.bf16.mxu1 %v1181_v46 }
  0x3c   :  { %1111 = vmatpush3.msra.mxu1 %v847_v18 }
  0x3d   :  { %665 = vperm.xlu0 %1137, %v567_v55   ;;  %670 = vperm.xlu1 %1138, %v568_v56  }
  0x3e   :  { %1112 = vmatprep.subr.mxu1 %v1226_v17 }
  0x3f   :  { %1113 = vmatpush3.msra.mxu1 %v846_v19 }
  0x41   :  { %675 = vperm.xlu0 %1137, %v569_v57   ;;  %680 = vperm.xlu1 %1138, %v570_v58  }
  0x42   :  { %423 = vmatmul.mubr.bf16.gmra.mxu0 %v1183_v51  ;;  %495 = vmatmul.mubr.bf16.gmra.mxu1 %v1184_v52 }
  0x43   :  { %430 = vmatprep.mubr.bf16.mxu0 %v1185_v53  ;;  %502 = vmatprep.mubr.bf16.mxu1 %v1187_v54 }
  0x45   :  { %685 = vperm.xlu0 %1137, %v571_v63   ;;  %690 = vperm.xlu1 %1138, %v572_v0  }
  0x49   :  { %695 = vperm.xlu0 %1137, %v573_v1   ;;  %700 = vperm.xlu1 %1138, %v574_v2  }
  0x4a   :  { %431 = vmatmul.mubr.bf16.gmra.mxu0 %v1189_v59  ;;  %503 = vmatmul.mubr.bf16.gmra.mxu1 %v1190_v60  ;;  %v1548_v59 = vld [vmem:[%s1697_s3] ss:$0 sm:$0xff] }
  0x4b   :  { %438 = vmatprep.mubr.bf16.mxu0 %v1191_v61  ;;  %510 = vmatprep.mubr.bf16.mxu1 %v1193_v62 }
  0x4d   :  { %705 = vperm.xlu0 %1137, %v575_v6   ;;  %710 = vperm.xlu1 %1138, %v576_v7  }
  0x51   :  { %715 = vperm.xlu0 %1137, %v577_v8   ;;  %720 = vperm.xlu1 %1138, %v578_v9  }
  0x52   :  { %439 = vmatmul.mubr.bf16.gmra.mxu0 %v1195_v3  ;;  %511 = vmatmul.mubr.bf16.gmra.mxu1 %v1196_v4 }
  0x53   :  { %446 = vmatprep.mubr.bf16.mxu0 %v1197_v5  ;;  %1114 = vmatprep.mubr.msk.f32.mxu1 %vm1227_vm1, %v1226_v17 }
  0x55   :  { %725 = vperm.xlu0 %1137, %v579_v12   ;;  %730 = vperm.xlu1 %1138, %v580_v13  }
  0x59   :  { %735 = vperm.xlu0 %1137, %v581_v14   ;;  %740 = vperm.xlu1 %1138, %v582_v15  }
  0x5a   :  { %447 = vmatmul.mubr.bf16.gmra.mxu0 %v1199_v10 }
  0x5b   :  { %454 = vmatprep.mubr.bf16.mxu0 %v1200_v11 }
  0x62   :  { %455 = vmatmul.mubr.bf16.gmra.mxu0 %v1202_v16 }
  0x84   :  { %v596_v33 = vpop.permute.xlu1 %595 }
  0x85   :  { %v586_v30 = vpop.permute.xlu0 %585 }
  0x88   :  { %v601_v41 = vpop.permute.xlu1 %600 }
  0x89   :  { %v591_v38 = vpop.permute.xlu0 %590 }
  0x8c   :  { %v1535_v48 = vpop.permute.xlu1 %610 }
  0x8d   :  { %v1533_v46 = vpop.permute.xlu0 %605 }
  0x90   :  { %v1543_v55 = vpop.permute.xlu1 %620 }
  0x91   :  { %v1539_v52 = vpop.permute.xlu0 %615 }
  0xa8   :  { %v1552_v0 = vpop.permute.xlu0 %625  ;;  %v1556_v4 = vpop.permute.xlu1 %630 }
  0xac   :  { %v1562_v15 = vpop.permute.xlu0 %635 }
  0xe2   :  { %v1011_v20 = vpop.f32.mrf.mxu0  ;;  %v1511_v21 = vpop.f32.mrf.mxu1 }
  0xe4   :  { %v1012_v22 = vpop.f32.mrf.mxu0  ;;  %v1513_v23 = vpop.f32.mrf.mxu1 }
  0xe5   :  { %v1013_v57 = vadd.f32 %v1012_v22, %v1011_v20  ;;  %v1567_v22 = vpop.permute.xlu1 %640 }
  0xe6   :  { %v1014_v24 = vpop.f32.mrf.mxu0  ;;  %v1515_v25 = vpop.f32.mrf.mxu1 }
  0xe7   :  { %v393_v2 = vadd.f32 %v1013_v57, %v1548_v59 }
  0xe8   :  { %v1015_v26 = vpop.f32.mrf.mxu0  ;;  %v1517_v27 = vpop.f32.mrf.mxu1 }
  0xe9   :  { %v1016_v56 = vadd.f32 %v1015_v26, %v1014_v24  ;;  %v519_v12 = vmax.f32 %v393_v2, 0.0 }
  0xea   :  { %v1017_v28 = vpop.f32.mrf.mxu0  ;;  %v1519_v29 = vpop.f32.mrf.mxu1 }
  0xeb   :  { %v396_v1 = vadd.f32 %v1016_v56, %v1548_v59  ;;  %v1573_v56 = vpop.permute.xlu0 %645 }
  0xec   :  { %v1018_v31 = vpop.f32.mrf.mxu0  ;;  %v1521_v32 = vpop.f32.mrf.mxu1 }
  0xed   :  { %v1019_v60 = vadd.f32 %v1018_v31, %v1017_v28  ;;  %v520_v10 = vmax.f32 %v396_v1, 0.0  ;;  %v743_v31 = vmul.f32 %v586_v30, %v519_v12  ;;  %v1578_v1 = vpop.permute.xlu1 %650 }
  0xee   :  { %v1020_v34 = vpop.f32.mrf.mxu0  ;;  %v1523_v35 = vpop.f32.mrf.mxu1 }
  0xef   :  { %v401_v5 = vadd.f32 %v1019_v60, %v1548_v59  ;;  %v744_v24 = vmul.f32 %v591_v38, %v520_v10  ;;  %v776_v30 = vsel %vm775_vm2, %v743_v31, 0.0 }
  0xf0   :  { %v1021_v36 = vpop.f32.mrf.mxu0  ;;  %v1525_v37 = vpop.f32.mrf.mxu1 }
  0xf1   :  { %v1022_v61 = vadd.f32 %v1021_v36, %v1020_v34  ;;  %v521_v16 = vmax.f32 %v401_v5, 0.0  ;;  %v777_v57 = vsel %vm775_vm2, %v744_v24, 0.0 }
  0xf2   :  { %v1023_v39 = vpop.f32.mrf.mxu0  ;;  %v1527_v40 = vpop.f32.mrf.mxu1 }
  0xf3   :  { %v404_v7 = vadd.f32 %v1022_v61, %v1548_v59 }
  0xf4   :  { %v1024_v42 = vpop.f32.mrf.mxu0  ;;  %v1529_v43 = vpop.f32.mrf.mxu1 }
  0xf5   :  { %v1025_v6 = vadd.f32 %v1024_v42, %v1023_v39  ;;  %v522_v18 = vmax.f32 %v404_v7, 0.0  ;;  %v745_v39 = vmul.f32 %v596_v33, %v521_v16 }
  0xf6   :  { %v1026_v44 = vpop.f32.mrf.mxu0  ;;  %v1531_v45 = vpop.f32.mrf.mxu1 }
  0xf7   :  { %v409_v17 = vadd.f32 %v1025_v6, %v1548_v59  ;;  %v779_v33 = vsel %vm775_vm2, %v745_v39, 0.0 }
  0xf8   :  { %v1027_v47 = vpop.f32.mrf.mxu0  ;;  %v1537_v49 = vpop.f32.mrf.mxu1 }
  0xf9   :  { %v1028_v11 = vadd.f32 %v1027_v47, %v1026_v44  ;;  %v523_v42 = vmax.f32 %v409_v17, 0.0  ;;  %v746_v47 = vmul.f32 %v601_v41, %v522_v18 }
  0xfa   :  { %v1029_v50 = vpop.f32.mrf.mxu0  ;;  %v1541_v53 = vpop.f32.mrf.mxu1 }
  0xfb   :  { %v412_v26 = vadd.f32 %v1028_v11, %v1548_v59  ;;  %v747_v41 = vmul.f32 %v1533_v46, %v523_v42  ;;  %v781_v5 = vsel %vm775_vm2, %v746_v47, 0.0  ;;  %v656_v46 = vpop.permute.xlu0 %655 }
  0xfc   :  { %v1030_v51 = vpop.f32.mrf.mxu0  ;;  %v1550_v62 = vpop.f32.mrf.mxu1 }
  0xfd   :  { %v1031_v13 = vadd.f32 %v1030_v51, %v1029_v50  ;;  %v524_v38 = vmax.f32 %v412_v26, 0.0  ;;  %v783_v17 = vsel %vm775_vm2, %v747_v41, 0.0 }
  0xfe   :  { %v1032_v54 = vpop.f32.mrf.mxu0  ;;  %v1560_v8 = vpop.f32.mrf.mxu1 }
  0xff   :  { %v417_v34 = vadd.f32 %v1031_v13, %v1548_v59 }
 0x100   :  { %v1033_v58 = vpop.f32.mrf.mxu0  ;;  %v1565_v19 = vpop.f32.mrf.mxu1 }
 0x101   :  { %v1034_v28 = vadd.f32 %v1033_v58, %v1032_v54  ;;  %v525_v58 = vmax.f32 %v417_v34, 0.0 }
 0x102   :  { %v1035_v63 = vpop.f32.mrf.mxu0  ;;  %v1571_v50 = vpop.f32.mrf.mxu1 }
 0x103   :  { %v420_v60 = vadd.f32 %v1034_v28, %v1548_v59 }
 0x104   :  { %v1036_v3 = vpop.f32.mrf.mxu0  ;;  %v1584_v6 = vpop.f32.mrf.mxu1 }
 0x105   :  { %v1037_v44 = vadd.f32 %v1036_v3, %v1035_v63  ;;  %v778_v3 = vadd.f32 %v777_v57, %v776_v30  ;;  %v526_v10 = vmax.f32 %v420_v60, 0.0 }
 0x106   :  { %v1038_v9 = vpop.f32.mrf.mxu0  ;;  %v1591_v28 = vpop.f32.mrf.mxu1 }
 0x107   :  { %v425_v63 = vadd.f32 %v1037_v44, %v1548_v59  ;;  %v780_v13 = vadd.f32 %v779_v33, %v778_v3 }
 0x108   :  { %v1039_v14 = vpop.f32.mrf.mxu0  ;;  %v1599_v30 = vpop.f32.mrf.mxu1 }
 0x109   :  { %v1040_v54 = vadd.f32 %v1039_v14, %v1038_v9  ;;  %v748_v9 = vmul.f32 %v1535_v48, %v524_v38  ;;  %v749_v14 = vmul.f32 %v1539_v52, %v525_v58  ;;  %v527_v18 = vmax.f32 %v425_v63, 0.0  ;;  %v661_v48 = vpop.permute.xlu1 %660 }
 0x10a   :  { %v1041_v20 = vpop.f32.mrf.mxu0  ;;  %v782_v26 = vadd.f32 %v781_v5, %v780_v13 }
 0x10b   :  { %v428_v11 = vadd.f32 %v1040_v54, %v1548_v59  ;;  %v785_v34 = vsel %vm775_vm2, %v748_v9, 0.0  ;;  %v787_v44 = vsel %vm775_vm2, %v749_v14, 0.0 }
 0x10c   :  { %v1042_v36 = vpop.f32.mrf.mxu0  ;;  %v784_v42 = vadd.f32 %v783_v17, %v782_v26 }
 0x10d   :  { %v1043_v2 = vadd.f32 %v1042_v36, %v1041_v20  ;;  %v750_v36 = vmul.f32 %v1543_v55, %v526_v10  ;;  %v528_v39 = vmax.f32 %v428_v11, 0.0 }
 0x10e   :  { %v1044_v51 = vpop.f32.mrf.mxu0  ;;  %v786_v54 = vadd.f32 %v785_v34, %v784_v42 }
 0x10f   :  { %v433_v20 = vadd.f32 %v1043_v2, %v1548_v59  ;;  %v789_v55 = vsel %vm775_vm2, %v750_v36, 0.0  ;;  %v752_v33 = vmul.f32 %v1556_v4, %v528_v39  ;;  %v1067_v36 = vadd.f32 %v1513_v23, %v1511_v21 }
 0x110   :  { %v1045_v61 = vpop.f32.mrf.mxu0  ;;  %v788_v2 = vadd.f32 %v787_v44, %v786_v54 }
 0x111   :  { %v1046_v12 = vadd.f32 %v1045_v61, %v1044_v51  ;;  %v751_v51 = vmul.f32 %v1552_v0, %v527_v18  ;;  %v529_v57 = vmax.f32 %v433_v20, 0.0  ;;  %v1601_v61 = vpop.permute.xlu0 %665  ;;  %v1606_v0 = vpop.permute.xlu1 %670  ;;  %v793_v14 = vsel %vm775_vm2, %v752_v33, 0.0 }
 0x112   :  { %v1047_v7 = vpop.f32.mrf.mxu0  ;;  %v790_v11 = vadd.f32 %v789_v55, %v788_v2 }
 0x113   :  { %v436_v52 = vadd.f32 %v1046_v12, %v1548_v59  ;;  %v791_v5 = vsel %vm775_vm2, %v751_v51, 0.0  ;;  %v1610_v12 = vpop.f32.mrf.mxu1  ;;  %v1070_v51 = vadd.f32 %v1517_v27, %v1515_v25 }
 0x114   :  { %v1048_v16 = vpop.f32.mrf.mxu0  ;;  %v792_v18 = vadd.f32 %v791_v5, %v790_v11 }
 0x115   :  { %v1049_v24 = vadd.f32 %v1048_v16, %v1047_v7  ;;  %v530_v41 = vmax.f32 %v436_v52, 0.0  ;;  %v753_v7 = vmul.f32 %v1562_v15, %v529_v57  ;;  %v1619_v52 = vpop.f32.mrf.mxu1  ;;  %v681_v57 = vpop.permute.xlu1 %680  ;;  %v468_v2 = vadd.f32 %v1070_v51, %v1548_v59 }
 0x116   :  { %v1050_v31 = vpop.f32.mrf.mxu0  ;;  %v794_v39 = vadd.f32 %v793_v14, %v792_v18 }
 0x117   :  { %v441_v38 = vadd.f32 %v1049_v24, %v1548_v59  ;;  %v754_v4 = vmul.f32 %v1567_v22, %v530_v41  ;;  %v676_v24 = vpop.permute.xlu0 %675  ;;  %v795_v26 = vsel %vm775_vm2, %v753_v7, 0.0  ;;  %v1628_v55 = vpop.f32.mrf.mxu1  ;;  %v1076_v7 = vadd.f32 %v1525_v37, %v1523_v35 }
 0x118   :  { %v1051_v47 = vpop.f32.mrf.mxu0  ;;  %v1082_v35 = vadd.f32 %v1537_v49, %v1531_v45 }
 0x119   :  { %v1052_v60 = vadd.f32 %v1051_v47, %v1050_v31  ;;  %v531_v9 = vmax.f32 %v441_v38, 0.0  ;;  %v797_v22 = vsel %vm775_vm2, %v754_v4, 0.0 }
 0x11a   :  { %v1053_v58 = vpop.f32.mrf.mxu0  ;;  %v484_v45 = vadd.f32 %v1082_v35, %v1548_v59 }
 0x11b   :  { %v444_v63 = vadd.f32 %v1052_v60, %v1548_v59  ;;  %v755_v15 = vmul.f32 %v1573_v56, %v531_v9  ;;  %v796_v56 = vadd.f32 %v795_v26, %v794_v39  ;;  %v538_v26 = vmax.f32 %v468_v2, 0.0 }
 0x11c   :  { %v1054_v3 = vpop.f32.mrf.mxu0 }
 0x11d   :  { %v1055_v10 = vadd.f32 %v1054_v3, %v1053_v58  ;;  %v532_v16 = vmax.f32 %v444_v63, 0.0  ;;  %v799_v60 = vsel %vm775_vm2, %v755_v15, 0.0  ;;  %v465_v58 = vadd.f32 %v1067_v36, %v1548_v59  ;;  %v686_v3 = vpop.permute.xlu0 %685 }
 0x11e   :  { %v1056_v13 = vpop.f32.mrf.mxu0  ;;  %v798_v33 = vadd.f32 %v797_v22, %v796_v56  ;;  %v1088_v56 = vadd.f32 %v1565_v19, %v1560_v8  ;;  %v1094_v19 = vadd.f32 %v1599_v30, %v1591_v28 }
 0x11f   :  { %v449_v17 = vadd.f32 %v1055_v10, %v1548_v59  ;;  %v756_v44 = vmul.f32 %v1578_v1, %v532_v16  ;;  %v1073_v1 = vadd.f32 %v1521_v32, %v1519_v29  ;;  %v1079_v29 = vadd.f32 %v1529_v43, %v1527_v40  ;;  %v691_v32 = vpop.permute.xlu1 %690 }
 0x120   :  { %v1057_v20 = vpop.f32.mrf.mxu0  ;;  %v492_v8 = vadd.f32 %v1088_v56, %v1548_v59 }
 0x121   :  { %v533_v31 = vmax.f32 %v449_v17, 0.0  ;;  %v1058_v34 = vadd.f32 %v1057_v20, %v1056_v13  ;;  %v801_v63 = vsel %vm775_vm2, %v756_v44, 0.0  ;;  %v537_v13 = vmax.f32 %v465_v58, 0.0 }
 0x122   :  { %v1059_v42 = vpop.f32.mrf.mxu0  ;;  %v473_v4 = vadd.f32 %v1073_v1, %v1548_v59  ;;  %v476_v20 = vadd.f32 %v1076_v7, %v1548_v59  ;;  %v481_v15 = vadd.f32 %v1079_v29, %v1548_v59 }
 0x123   :  { %v452_v47 = vadd.f32 %v1058_v34, %v1548_v59  ;;  %v757_v54 = vmul.f32 %v656_v46, %v533_v31  ;;  %v800_v46 = vadd.f32 %v799_v60, %v798_v33  ;;  %v696_v31 = vpop.permute.xlu0 %695  ;;  %v761_v39 = vmul.f32 %v676_v24, %v537_v13  ;;  %v701_v49 = vpop.permute.xlu1 %700 }
 0x124   :  { %v1060_v38 = vpop.f32.mrf.mxu0  ;;  %v540_v51 = vmax.f32 %v476_v20, 0.0  ;;  %v541_v60 = vmax.f32 %v481_v15, 0.0 }
 0x125   :  { %v534_v21 = vmax.f32 %v452_v47, 0.0  ;;  %v1061_v23 = vadd.f32 %v1060_v38, %v1059_v42  ;;  %v803_v9 = vsel %vm775_vm2, %v757_v54, 0.0  ;;  %v802_v14 = vadd.f32 %v801_v63, %v800_v46 }
 0x126   :  { %v1062_v41 = vpop.f32.mrf.mxu0  ;;  %v539_v42 = vmax.f32 %v473_v4, 0.0  ;;  %v762_v47 = vmul.f32 %v681_v57, %v538_v26  ;;  %v765_v1 = vmul.f32 %v696_v31, %v541_v60 }
 0x127   :  { %v758_v25 = vmul.f32 %v661_v48, %v534_v21  ;;  %v457_v27 = vadd.f32 %v1061_v23, %v1548_v59  ;;  %v1099_v48 = vpop.f32.mrf.mxu1  ;;  %v804_v37 = vadd.f32 %v803_v9, %v802_v14  ;;  %v811_v21 = vsel %vm775_vm2, %v761_v39, 0.0  ;;  %v706_v58 = vpop.permute.xlu0 %705 }
 0x128   :  { %v1063_v5 = vpop.f32.mrf.mxu0  ;;  %v763_v23 = vmul.f32 %v686_v3, %v539_v42  ;;  %v813_v33 = vsel %vm775_vm2, %v762_v47, 0.0  ;;  %v711_v63 = vpop.permute.xlu1 %710  ;;  %v544_v9 = vmax.f32 %v492_v8, 0.0  ;;  %v1100_v28 = vadd.f32 %v1099_v48, %v1628_v55 }
 0x129   :  { %v535_v10 = vmax.f32 %v457_v27, 0.0  ;;  %v1064_v11 = vadd.f32 %v1063_v5, %v1062_v41  ;;  %v805_v16 = vsel %vm775_vm2, %v758_v25, 0.0  ;;  %v1101_v34 = vpop.f32.mrf.mxu1  ;;  %v764_v41 = vmul.f32 %v691_v32, %v540_v51 }
 0x12a   :  { %v806_v36 = vadd.f32 %v805_v16, %v804_v37  ;;  %v815_v2 = vsel %vm775_vm2, %v763_v23, 0.0  ;;  %v819_v30 = vsel %vm775_vm2, %v765_v1, 0.0  ;;  %v508_v37 = vadd.f32 %v1100_v28, %v1548_v59 }
 0x12b   :  { %v759_v17 = vmul.f32 %v1601_v61, %v535_v10  ;;  %v460_v18 = vadd.f32 %v1064_v11, %v1548_v59  ;;  %v1085_v61 = vadd.f32 %v1550_v62, %v1541_v53  ;;  %v1102_v54 = vpop.f32.mrf.mxu1  ;;  %v1091_v62 = vadd.f32 %v1584_v6, %v1571_v50  ;;  %v716_v11 = vpop.permute.xlu0 %715 }
 0x12c   :  { %v1097_v6 = vadd.f32 %v1619_v52, %v1610_v12  ;;  %v817_v7 = vsel %vm775_vm2, %v764_v41, 0.0  ;;  %v500_v10 = vadd.f32 %v1094_v19, %v1548_v59  ;;  %v1103_v16 = vadd.f32 %v1102_v54, %v1101_v34  ;;  %v721_v52 = vpop.permute.xlu1 %720 }
 0x12d   :  { %v807_v40 = vsel %vm775_vm2, %v759_v17, 0.0  ;;  %v536_v43 = vmax.f32 %v460_v18, 0.0  ;;  %v489_v53 = vadd.f32 %v1085_v61, %v1548_v59  ;;  %v1104_v25 = vpop.f32.mrf.mxu1  ;;  %v497_v50 = vadd.f32 %v1091_v62, %v1548_v59 }
 0x12e   :  { %v808_v44 = vadd.f32 %v807_v40, %v806_v36  ;;  %v505_v4 = vadd.f32 %v1097_v6, %v1548_v59  ;;  %v768_v18 = vmul.f32 %v711_v63, %v544_v9  ;;  %v546_v35 = vmax.f32 %v500_v10, 0.0 }
 0x12f   :  { %v760_v22 = vmul.f32 %v1606_v0, %v536_v43  ;;  %v542_v0 = vmax.f32 %v484_v45, 0.0  ;;  %v543_v3 = vmax.f32 %v489_v53, 0.0  ;;  %v1105_v13 = vpop.f32.mrf.mxu1  ;;  %v545_v14 = vmax.f32 %v497_v50, 0.0  ;;  %v726_v15 = vpop.permute.xlu0 %725 }
 0x130   :  { %v1106_v20 = vadd.f32 %v1105_v13, %v1104_v25  ;;  %v547_v40 = vmax.f32 %v505_v4, 0.0  ;;  %v513_v43 = vadd.f32 %v1103_v16, %v1548_v59  ;;  %v825_v34 = vsel %vm775_vm2, %v768_v18, 0.0  ;;  %v731_v61 = vpop.permute.xlu1 %730 }
 0x131   :  { %v809_v38 = vsel %vm775_vm2, %v760_v22, 0.0  ;;  %v766_v46 = vmul.f32 %v701_v49, %v542_v0  ;;  %v767_v32 = vmul.f32 %v706_v58, %v543_v3  ;;  %v769_v26 = vmul.f32 %v716_v11, %v545_v14 }
 0x132   :  { %v810_v24 = vadd.f32 %v809_v38, %v808_v44  ;;  %v770_v36 = vmul.f32 %v721_v52, %v546_v35  ;;  %v548_v39 = vmax.f32 %v508_v37, 0.0  ;;  %v516_v42 = vadd.f32 %v1106_v20, %v1548_v59 }
 0x133   :  { %v821_v12 = vsel %vm775_vm2, %v766_v46, 0.0  ;;  %v823_v48 = vsel %vm775_vm2, %v767_v32, 0.0  ;;  %v827_v45 = vsel %vm775_vm2, %v769_v26, 0.0  ;;  %v771_v49 = vmul.f32 %v726_v15, %v547_v40  ;;  %v736_v60 = vpop.permute.xlu0 %735  ;;  %v928_v46 = vld [vmem:[%s1699_s5] sm:$0x1] }
 0x134   :  { %v812_v57 = vadd.f32 %v811_v21, %v810_v24  ;;  %v549_v44 = vmax.f32 %v513_v43, 0.0  ;;  %v829_v51 = vsel %vm775_vm2, %v770_v36, 0.0  ;;  %v772_v56 = vmul.f32 %v731_v61, %v548_v39  ;;  %v741_v23 = vpop.permute.xlu1 %740 }
 0x135   :  { %v550_v38 = vmax.f32 %v516_v42, 0.0  ;;  %v831_v24 = vsel %vm775_vm2, %v771_v49, 0.0 }
 0x136   :  { %v814_v27 = vadd.f32 %v813_v33, %v812_v57  ;;  %v773_v21 = vmul.f32 %v736_v60, %v549_v44  ;;  %v833_v59 = vsel %vm775_vm2, %v772_v56, 0.0 }
 0x137   :  { %v774_v62 = vmul.f32 %v741_v23, %v550_v38 }
 0x138   :  { %v816_v5 = vadd.f32 %v815_v2, %v814_v27  ;;  %v835_v58 = vsel %vm775_vm2, %v773_v21, 0.0  ;;  %v845_v2 = vld [vmem:[#allocation2] sm:$0x1] }
 0x139   :  { %v837_v33 = vsel %vm775_vm2, %v774_v62, 0.0 }
 0x13a   :  { %v818_v29 = vadd.f32 %v817_v7, %v816_v5 }
 0x13c   :  { %v820_v17 = vadd.f32 %v819_v30, %v818_v29 }
 0x13e   :  { %v822_v55 = vadd.f32 %v821_v12, %v820_v17 }
 0x140   :  { %v824_v31 = vadd.f32 %v823_v48, %v822_v55 }
 0x142   :  { %v826_v22 = vadd.f32 %v825_v34, %v824_v31 }
 0x144   :  { %v828_v47 = vadd.f32 %v827_v45, %v826_v22 }
 0x146   :  { %v830_v54 = vadd.f32 %v829_v51, %v828_v47 }
 0x148   :  { %v832_v53 = vadd.f32 %v831_v24, %v830_v54 }
 0x14a   :  { %v834_v0 = vadd.f32 %v833_v59, %v832_v53 }
 0x14c   :  { %v836_v57 = vadd.f32 %v835_v58, %v834_v0 }
 0x14e   :  { %v838_v41 = vadd.f32 %v837_v33, %v836_v57 }
 0x150   :  { %v839_v8 = vrot.slane %v838_v41, 4 }
 0x152   :  { %v840_v19 = vadd.f32 %v839_v8, %v838_v41 }
 0x154   :  { %v841_v1 = vrot.slane %v840_v19, 2 }
 0x156   :  { %v842_v63 = vadd.f32 %v841_v1, %v840_v19 }
 0x158   :  { %v843_v25 = vrot.slane %v842_v63, 1 }
 0x15a   :  { %v844_v27 = vadd.f32 %v843_v25, %v842_v63 }
 0x15c   :  { %1115 = vmatmul.mubr.msk.f32.vlgmr.msra.gmra.mxu1 %vm775_vm2, %v844_v27 }
 0x21c   :  { %v917_v3 = vpop.f32.mrf.mxu1 }
 0x21d   :  { %v921_v50 = vadd.f32 %v917_v3, %v845_v2 }
 0x21e   :  { %v1116_v6 = vpop.f32.mrf.mxu1 }
 0x21f   :  { %923 = vst.msk [vmem:[#allocation2] sm:$0x1] %vm29_vm0, %v921_v50 }
 0x226   :  { %v927_v5 = vld [vmem:[#allocation2] sm:$0x1] }
 0x227   :  { %v929_v7 = vadd.f32 %v928_v46, %v927_v5 }
 0x229   :  { %930 = vst.msk [vmem:[#allocation2] sm:$0x1] %vm29_vm0, %v929_v7 }
 0x22a   :  { %1214 = shalt.err (!%p1211_p4)
}
 0x22b   :  { %940 = dma.vmem_to_hbm [thread:$0]  %s938_s13, 16, %s1700_s6, [#allocation3]  }
 0x22c   :  { %1223 = dma.done.wait [#allocation3], 16  }
 0x22d   :  { %1224 = vsyncadd [#allocation3], 4294967280 }
 0x22e   :  { %944 = vsyncpa [#allocation3], 1 }

</bundles_post_ra>
